<compile_context>
chip_gen: v5e
topology: v5e:2x2
jax: 0.10.0
libtpu: 0.0.40
codegen_flags: <defaults>
</compile_context>

<pallas_src>
import functools

import jax
import jax.numpy as jnp
from jax import lax
from jax.experimental import pallas as pl
from jax.experimental.pallas import tpu as pltpu

_EPS = 1e-5
_LANE = 128


def _round_up(n, m):
    return ((n + m - 1) // m) * m


def _bytes(a):
    return a.size * a.dtype.itemsize


def _vmem_capacity_bytes():
    try:
        return int(pltpu.get_tpu_info().vmem_capacity_bytes)
    except Exception:
        return 64 * 2**20  # conservative fallback (v7x per-TensorCore VMEM)


# ----------------------------------------------------------------------------
# Kernel bodies
# ----------------------------------------------------------------------------

def _bn_relu(z, gamma, beta, inv_b):
    """Training-mode BatchNorm1d (batch stats, biased var) + affine + ReLU.

    Two-pass (centered) variance for robustness when |mean| >> std; folded into one
    scale/shift FMA. All math in f32 (padded feature columns stay exactly 0)."""
    mean = jnp.sum(z, axis=0, keepdims=True) * inv_b
    zc = z - mean
    var = jnp.sum(zc * zc, axis=0, keepdims=True) * inv_b
    scale = gamma * lax.rsqrt(var + _EPS)            # EUP rsqrt
    return jnp.maximum(zc * scale + beta, 0.0)


def _mlp_fused_kernel(x_ref, w_in_ref, b_in_ref, w_h_ref, gb_ref, w_out_ref,
                      b_out_ref, o_ref):
    """Whole model resident in VMEM; single invocation, layers unrolled in-kernel."""
    inv_b = 1.0 / x_ref.shape[0]
    num_layers = w_h_ref.shape[0]

    h0 = (jnp.dot(x_ref[...], w_in_ref[...], preferred_element_type=jnp.float32)
          + b_in_ref[...]).astype(jnp.bfloat16)

    def layer(l, h):
        # Hidden Linear bias omitted: a per-feature constant added right before
        # training-mode BatchNorm is exactly cancelled by the mean subtraction.
        z = jnp.dot(h, w_h_ref[l], preferred_element_type=jnp.float32)
        h_new = _bn_relu(z, gb_ref[l, 0:1, :], gb_ref[l, 1:2, :], inv_b)
        return h_new.astype(jnp.bfloat16)            # h only feeds the next bf16 matmul

    h = lax.fori_loop(0, num_layers, layer, h0, unroll=True)

    o_ref[...] = (jnp.dot(h, w_out_ref[...], preferred_element_type=jnp.float32)
                  + b_out_ref[...]).astype(o_ref.dtype)


def _mlp_stream_kernel(x_ref, w_in_ref, b_in_ref, w_h_ref, gb_ref, w_out_ref,
                       b_out_ref, o_ref, h_ref):
    """One hidden layer per grid step; bf16 activation resident in VMEM scratch while
    per-layer weights (w_h[l], gamma/beta[l]) are double-buffered from HBM."""
    l = pl.program_id(0)
    inv_b = 1.0 / x_ref.shape[0]

    @pl.when(l == 0)
    def _():
        h_ref[...] = (jnp.dot(x_ref[...], w_in_ref[...],
                              preferred_element_type=jnp.float32)
                      + b_in_ref[...]).astype(h_ref.dtype)

    z = jnp.dot(h_ref[...], w_h_ref[0], preferred_element_type=jnp.float32)
    h_ref[...] = _bn_relu(z, gb_ref[0, 0:1, :], gb_ref[0, 1:2, :],
                          inv_b).astype(h_ref.dtype)

    @pl.when(l == pl.num_programs(0) - 1)
    def _():
        o_ref[...] = (jnp.dot(h_ref[...], w_out_ref[...],
                              preferred_element_type=jnp.float32)
                      + b_out_ref[...]).astype(o_ref.dtype)


# ----------------------------------------------------------------------------
# Wrapper: one-time param prep + jitted forward
# ----------------------------------------------------------------------------

def make_mlp_forward(w_in, b_in, w_h, b_h, gamma, beta, w_out, b_out,
                     *, force_path=None):
    """Prep params once (pad feature dims to multiples of 128, cast matmul operands to
    bf16, fuse gamma/beta), then return a jitted forward(x) closure that reuses the
    cached padded copies on every call."""
    del b_h  # exact no-op under training-mode BN (mean subtraction cancels it)

    IN, H = w_in.shape
    L = w_h.shape[0]
    OUT = w_out.shape[1]
    IN_P, H_P, OUT_P = (_round_up(d, _LANE) for d in (IN, H, OUT))
    f32, bf16 = jnp.float32, jnp.bfloat16

    # ---- one-time pad + cast (cached device arrays; NOT redone per call) ----
    w_in_p = jnp.pad(w_in, ((0, IN_P - IN), (0, H_P - H))).astype(bf16)
    b_in_p = jnp.pad(b_in.reshape(1, H), ((0, 0), (0, H_P - H))).astype(f32)
    w_h_p = jnp.pad(w_h, ((0, 0), (0, H_P - H), (0, H_P - H))).astype(bf16)
    gb_p = jnp.pad(jnp.stack([gamma.reshape(L, H), beta.reshape(L, H)], axis=1),
                   ((0, 0), (0, 0), (0, H_P - H))).astype(f32)
    w_out_p = jnp.pad(w_out, ((0, H_P - H), (0, OUT_P - OUT))).astype(bf16)
    b_out_p = jnp.pad(b_out.reshape(1, OUT), ((0, 0), (0, OUT_P - OUT))).astype(f32)
    prepped = jax.block_until_ready(
        (w_in_p, b_in_p, w_h_p, gb_p, w_out_p, b_out_p))

    vmem_cap = _vmem_capacity_bytes()

    @jax.jit
    def _forward(x, w_in_p, b_in_p, w_h_p, gb_p, w_out_p, b_out_p):
        B = x.shape[0]
        x_p = jnp.pad(x, ((0, 0), (0, IN_P - IN))).astype(bf16)

        weight_bytes = (_bytes(w_in_p) + _bytes(b_in_p) + _bytes(w_h_p)
                        + _bytes(gb_p) + _bytes(w_out_p) + _bytes(b_out_p))
        act_bytes = B * IN_P * 2 + B * OUT_P * 4 + 4 * B * H_P * 4
        fused_est = weight_bytes + act_bytes

        if force_path is None:
            use_fused = fused_est <= int(0.6 * vmem_cap)
        else:
            use_fused = force_path == "fused"

        if use_fused:
            vmem_limit = int(min(0.9 * vmem_cap, max(2 * fused_est, 8 << 20)))
            out_p = pl.pallas_call(
                _mlp_fused_kernel,
                out_shape=jax.ShapeDtypeStruct((B, OUT_P), f32),
                compiler_params=pltpu.CompilerParams(
                    vmem_limit_bytes=vmem_limit),
            )(x_p, w_in_p, b_in_p, w_h_p, gb_p, w_out_p, b_out_p)
        else:
            assert L >= 1, "streaming path needs at least one hidden layer"
            # Every spec'd block is double-buffered by default (residents included).
            resident = (_bytes(w_in_p) + _bytes(b_in_p) + _bytes(w_out_p)
                        + _bytes(b_out_p) + B * IN_P * 2 + B * OUT_P * 4)
            per_layer = H_P * H_P * 2 + 2 * H_P * 4
            stream_est = 2 * (resident + per_layer) + B * H_P * 2 + 3 * B * H_P * 4
            assert stream_est <= int(0.9 * vmem_cap), (
                f"streaming MLP tile ({stream_est} B) exceeds VMEM budget "
                f"({int(0.9 * vmem_cap)} B); tile w_h over its output-feature axis")
            vmem_limit = int(min(0.9 * vmem_cap, max(stream_est + (8 << 20), 8 << 20)))
            out_p = pl.pallas_call(
                _mlp_stream_kernel,
                out_shape=jax.ShapeDtypeStruct((B, OUT_P), f32),
                grid_spec=pltpu.PrefetchScalarGridSpec(
                    num_scalar_prefetch=0,
                    grid=(L,),
                    in_specs=[
                        pl.BlockSpec((B, IN_P), lambda l: (0, 0)),          # x      (resident)
                        pl.BlockSpec((IN_P, H_P), lambda l: (0, 0)),        # w_in   (resident)
                        pl.BlockSpec((1, H_P), lambda l: (0, 0)),           # b_in   (resident)
                        pl.BlockSpec((1, H_P, H_P), lambda l: (l, 0, 0)),   # w_h[l] (pipelined)
                        pl.BlockSpec((1, 2, H_P), lambda l: (l, 0, 0)),     # gamma/beta[l]
                        pl.BlockSpec((H_P, OUT_P), lambda l: (0, 0)),       # w_out  (resident)
                        pl.BlockSpec((1, OUT_P), lambda l: (0, 0)),         # b_out  (resident)
                    ],
                    out_specs=pl.BlockSpec((B, OUT_P), lambda l: (0, 0)),
                    scratch_shapes=[pltpu.VMEM((B, H_P), bf16)],            # resident bf16 h
                ),
                compiler_params=pltpu.CompilerParams(
                    dimension_semantics=("arbitrary",),   # layer axis is sequential
                    vmem_limit_bytes=vmem_limit,
                ),
            )(x_p, w_in_p, b_in_p, w_h_p, gb_p, w_out_p, b_out_p)

        return out_p[:, :OUT]

    def forward(x):
        return _forward(x, *prepped)

    return forward


# ----------------------------------------------------------------------------
# Reference, init, demo
# ----------------------------------------------------------------------------

def mlp_reference(x, w_in, b_in, w_h, b_h, gamma, beta, w_out, b_out):
    """Pure-JAX f32 reference matching the PyTorch module (training-mode BN)."""
    h = x @ w_in + b_in
    for l in range(w_h.shape[0]):
        h = h @ w_h[l] + b_h[l]
        mean = jnp.mean(h, axis=0, keepdims=True)
        var = jnp.mean((h - mean) ** 2, axis=0, keepdims=True)
        h = (h - mean) * lax.rsqrt(var + _EPS) * gamma[l] + beta[l]
        h = jnp.maximum(h, 0.0)
    return h @ w_out + b_out


def init_params(key, input_size, hidden, output_size, num_layers):
    """Deterministic init mimicking PyTorch Linear defaults (uniform +/- 1/sqrt(fan_in))."""
    ks = jax.random.split(key, 2 * (num_layers + 2))
    ki = iter(ks)

    def linear(fan_in, fan_out):
        bound = fan_in ** -0.5
        w = jax.random.uniform(next(ki), (fan_in, fan_out), jnp.float32, -bound, bound)
        b = jax.random.uniform(next(ki), (fan_out,), jnp.float32, -bound, bound)
        return w, b

    w_in, b_in = linear(input_size, hidden)
    w_h_l, b_h_l = [], []
    for _ in range(num_layers):
        w, b = linear(hidden, hidden)
        w_h_l.append(w)
        b_h_l.append(b)
    w_h = jnp.stack(w_h_l)                       # [L, H, H]
    b_h = jnp.stack(b_h_l)                       # [L, H]
    gamma = jnp.ones((num_layers, hidden), jnp.float32)    # BatchNorm1d default weight
    beta = jnp.zeros((num_layers, hidden), jnp.float32)    # BatchNorm1d default bias
    w_out, b_out = linear(hidden, output_size)
    return w_in, b_in, w_h, b_h, gamma, beta, w_out, b_out


if __name__ == "__main__":
    B, IN, H, OUT, L = 8, 16, 32, 8, 3

    key = jax.random.PRNGKey(0)
    kx, kp = jax.random.split(key)
    x = jax.random.normal(kx, (B, IN), jnp.float32)
    params = init_params(kp, IN, H, OUT, L)

    y_ref = mlp_reference(x, *params)

    # Auto path: fused single-step kernel at these small shapes.
    fwd = make_mlp_forward(*params)
    y = jax.block_until_ready(fwd(x))
    assert y.shape == (B, OUT) and y.dtype == jnp.float32
    # Loose tolerance: matmul operands are bf16 (f32 accumulate) by design.
    assert jnp.allclose(y, y_ref, atol=1.5e-1, rtol=1e-1), \
        f"fused max_err={float(jnp.max(jnp.abs(y - y_ref)))}"

    # Streaming (per-layer weight pipeline) path, forced, to cover the production tiling.
    fwd_s = make_mlp_forward(*params, force_path="stream")
    y_s = jax.block_until_ready(fwd_s(x))
    assert jnp.allclose(y_s, y_ref, atol=1.5e-1, rtol=1e-1), \
        f"stream max_err={float(jnp.max(jnp.abs(y_s - y_ref)))}"

    print("KERNEL_OK")
</pallas_src>

<mosaic_0001>
module attributes {stable_mosaic.version = 11 : i64} {
  func.func @_mlp_fused_kernel(%arg0: memref<8x128xbf16, #tpu.memory_space<vmem>>, %arg1: memref<128x128xbf16, #tpu.memory_space<vmem>>, %arg2: memref<1x128xf32, #tpu.memory_space<vmem>>, %arg3: memref<3x128x128xbf16, #tpu.memory_space<vmem>>, %arg4: memref<3x2x128xf32, #tpu.memory_space<vmem>>, %arg5: memref<128x128xbf16, #tpu.memory_space<vmem>>, %arg6: memref<1x128xf32, #tpu.memory_space<vmem>>, %arg7: memref<8x128xf32, #tpu.memory_space<vmem>>) attributes {dimension_semantics = [], scalar_prefetch = 0 : i64, scratch_operands = 0 : i64, tpu.core_type = #tpu.core_type<tc>} {
    %c0 = arith.constant 0 : index
    %c0_0 = arith.constant 0 : index
    %0 = vector.load %arg0[%c0, %c0_0] : memref<8x128xbf16, #tpu.memory_space<vmem>>, vector<8x128xbf16>
    %c0_1 = arith.constant 0 : index
    %c0_2 = arith.constant 0 : index
    %1 = vector.load %arg1[%c0_1, %c0_2] : memref<128x128xbf16, #tpu.memory_space<vmem>>, vector<128x128xbf16>
    %cst = arith.constant dense<0.000000e+00> : vector<8x128xf32>
    %2 = tpu.matmul %0, %1, %cst {dimension_numbers = #tpu.dot_dimension_numbers<[1], [0], [0], [1], [0, 0, 1, 1], [], []>} : vector<8x128xbf16>, vector<128x128xbf16>, vector<8x128xf32> -> vector<8x128xf32>
    %c0_3 = arith.constant 0 : index
    %c0_4 = arith.constant 0 : index
    %3 = vector.load %arg2[%c0_3, %c0_4] : memref<1x128xf32, #tpu.memory_space<vmem>>, vector<1x128xf32>
    %4 = vector.broadcast %3 : vector<1x128xf32> to vector<8x128xf32>
    %5 = arith.addf %2, %4 : vector<8x128xf32>
    %6 = arith.truncf %5 : vector<8x128xf32> to vector<8x128xbf16>
    %c0_i32 = arith.constant 0 : i32
    %7 = arith.index_cast %c0_i32 : i32 to index
    %c0_5 = arith.constant 0 : index
    %c0_6 = arith.constant 0 : index
    %8 = vector.load %arg3[%7, %c0_5, %c0_6] : memref<3x128x128xbf16, #tpu.memory_space<vmem>>, vector<1x128x128xbf16>
    %9 = vector.shape_cast %8 : vector<1x128x128xbf16> to vector<128x128xbf16>
    %cst_7 = arith.constant dense<0.000000e+00> : vector<8x128xf32>
    %10 = tpu.matmul %6, %9, %cst_7 {dimension_numbers = #tpu.dot_dimension_numbers<[1], [0], [0], [1], [0, 0, 1, 1], [], []>} : vector<8x128xbf16>, vector<128x128xbf16>, vector<8x128xf32> -> vector<8x128xf32>
    %11 = arith.index_cast %c0_i32 : i32 to index
    %c0_8 = arith.constant 0 : index
    %c0_9 = arith.constant 0 : index
    %12 = vector.load %arg4[%11, %c0_8, %c0_9] : memref<3x2x128xf32, #tpu.memory_space<vmem>>, vector<1x1x128xf32>
    %13 = vector.shape_cast %12 : vector<1x1x128xf32> to vector<1x128xf32>
    %14 = arith.index_cast %c0_i32 : i32 to index
    %c1 = arith.constant 1 : index
    %c0_10 = arith.constant 0 : index
    %15 = vector.load %arg4[%14, %c1, %c0_10] : memref<3x2x128xf32, #tpu.memory_space<vmem>>, vector<1x1x128xf32>
    %16 = vector.shape_cast %15 : vector<1x1x128xf32> to vector<1x128xf32>
    %cst_11 = arith.constant dense<0.000000e+00> : vector<128xf32>
    %17 = vector.multi_reduction <add>, %10, %cst_11 [0] : vector<8x128xf32> to vector<128xf32>
    %18 = vector.shape_cast %17 : vector<128xf32> to vector<1x128xf32>
    %cst_12 = arith.constant 1.250000e-01 : f32
    %19 = vector.broadcast %cst_12 : f32 to vector<1x128xf32>
    %20 = arith.mulf %18, %19 : vector<1x128xf32>
    %21 = vector.broadcast %20 : vector<1x128xf32> to vector<8x128xf32>
    %22 = arith.subf %10, %21 : vector<8x128xf32>
    %23 = arith.mulf %22, %22 : vector<8x128xf32>
    %cst_13 = arith.constant dense<0.000000e+00> : vector<128xf32>
    %24 = vector.multi_reduction <add>, %23, %cst_13 [0] : vector<8x128xf32> to vector<128xf32>
    %25 = vector.shape_cast %24 : vector<128xf32> to vector<1x128xf32>
    %cst_14 = arith.constant 1.250000e-01 : f32
    %26 = vector.broadcast %cst_14 : f32 to vector<1x128xf32>
    %27 = arith.mulf %25, %26 : vector<1x128xf32>
    %cst_15 = arith.constant 9.99999974E-6 : f32
    %28 = vector.broadcast %cst_15 : f32 to vector<1x128xf32>
    %29 = arith.addf %27, %28 : vector<1x128xf32>
    %30 = math.rsqrt %29 : vector<1x128xf32>
    %31 = arith.mulf %13, %30 : vector<1x128xf32>
    %32 = vector.broadcast %31 : vector<1x128xf32> to vector<8x128xf32>
    %33 = arith.mulf %22, %32 : vector<8x128xf32>
    %34 = vector.broadcast %16 : vector<1x128xf32> to vector<8x128xf32>
    %35 = arith.addf %33, %34 : vector<8x128xf32>
    %cst_16 = arith.constant 0.000000e+00 : f32
    %36 = vector.broadcast %cst_16 : f32 to vector<8x128xf32>
    %37 = arith.maximumf %35, %36 : vector<8x128xf32>
    %38 = arith.truncf %37 : vector<8x128xf32> to vector<8x128xbf16>
    %c1_i32 = arith.constant 1 : i32
    %39 = arith.index_cast %c1_i32 : i32 to index
    %c0_17 = arith.constant 0 : index
    %c0_18 = arith.constant 0 : index
    %40 = vector.load %arg3[%39, %c0_17, %c0_18] : memref<3x128x128xbf16, #tpu.memory_space<vmem>>, vector<1x128x128xbf16>
    %41 = vector.shape_cast %40 : vector<1x128x128xbf16> to vector<128x128xbf16>
    %cst_19 = arith.constant dense<0.000000e+00> : vector<8x128xf32>
    %42 = tpu.matmul %38, %41, %cst_19 {dimension_numbers = #tpu.dot_dimension_numbers<[1], [0], [0], [1], [0, 0, 1, 1], [], []>} : vector<8x128xbf16>, vector<128x128xbf16>, vector<8x128xf32> -> vector<8x128xf32>
    %43 = arith.index_cast %c1_i32 : i32 to index
    %c0_20 = arith.constant 0 : index
    %c0_21 = arith.constant 0 : index
    %44 = vector.load %arg4[%43, %c0_20, %c0_21] : memref<3x2x128xf32, #tpu.memory_space<vmem>>, vector<1x1x128xf32>
    %45 = vector.shape_cast %44 : vector<1x1x128xf32> to vector<1x128xf32>
    %46 = arith.index_cast %c1_i32 : i32 to index
    %c1_22 = arith.constant 1 : index
    %c0_23 = arith.constant 0 : index
    %47 = vector.load %arg4[%46, %c1_22, %c0_23] : memref<3x2x128xf32, #tpu.memory_space<vmem>>, vector<1x1x128xf32>
    %48 = vector.shape_cast %47 : vector<1x1x128xf32> to vector<1x128xf32>
    %cst_24 = arith.constant dense<0.000000e+00> : vector<128xf32>
    %49 = vector.multi_reduction <add>, %42, %cst_24 [0] : vector<8x128xf32> to vector<128xf32>
    %50 = vector.shape_cast %49 : vector<128xf32> to vector<1x128xf32>
    %cst_25 = arith.constant 1.250000e-01 : f32
    %51 = vector.broadcast %cst_25 : f32 to vector<1x128xf32>
    %52 = arith.mulf %50, %51 : vector<1x128xf32>
    %53 = vector.broadcast %52 : vector<1x128xf32> to vector<8x128xf32>
    %54 = arith.subf %42, %53 : vector<8x128xf32>
    %55 = arith.mulf %54, %54 : vector<8x128xf32>
    %cst_26 = arith.constant dense<0.000000e+00> : vector<128xf32>
    %56 = vector.multi_reduction <add>, %55, %cst_26 [0] : vector<8x128xf32> to vector<128xf32>
    %57 = vector.shape_cast %56 : vector<128xf32> to vector<1x128xf32>
    %cst_27 = arith.constant 1.250000e-01 : f32
    %58 = vector.broadcast %cst_27 : f32 to vector<1x128xf32>
    %59 = arith.mulf %57, %58 : vector<1x128xf32>
    %cst_28 = arith.constant 9.99999974E-6 : f32
    %60 = vector.broadcast %cst_28 : f32 to vector<1x128xf32>
    %61 = arith.addf %59, %60 : vector<1x128xf32>
    %62 = math.rsqrt %61 : vector<1x128xf32>
    %63 = arith.mulf %45, %62 : vector<1x128xf32>
    %64 = vector.broadcast %63 : vector<1x128xf32> to vector<8x128xf32>
    %65 = arith.mulf %54, %64 : vector<8x128xf32>
    %66 = vector.broadcast %48 : vector<1x128xf32> to vector<8x128xf32>
    %67 = arith.addf %65, %66 : vector<8x128xf32>
    %cst_29 = arith.constant 0.000000e+00 : f32
    %68 = vector.broadcast %cst_29 : f32 to vector<8x128xf32>
    %69 = arith.maximumf %67, %68 : vector<8x128xf32>
    %70 = arith.truncf %69 : vector<8x128xf32> to vector<8x128xbf16>
    %c2_i32 = arith.constant 2 : i32
    %71 = arith.index_cast %c2_i32 : i32 to index
    %c0_30 = arith.constant 0 : index
    %c0_31 = arith.constant 0 : index
    %72 = vector.load %arg3[%71, %c0_30, %c0_31] : memref<3x128x128xbf16, #tpu.memory_space<vmem>>, vector<1x128x128xbf16>
    %73 = vector.shape_cast %72 : vector<1x128x128xbf16> to vector<128x128xbf16>
    %cst_32 = arith.constant dense<0.000000e+00> : vector<8x128xf32>
    %74 = tpu.matmul %70, %73, %cst_32 {dimension_numbers = #tpu.dot_dimension_numbers<[1], [0], [0], [1], [0, 0, 1, 1], [], []>} : vector<8x128xbf16>, vector<128x128xbf16>, vector<8x128xf32> -> vector<8x128xf32>
    %75 = arith.index_cast %c2_i32 : i32 to index
    %c0_33 = arith.constant 0 : index
    %c0_34 = arith.constant 0 : index
    %76 = vector.load %arg4[%75, %c0_33, %c0_34] : memref<3x2x128xf32, #tpu.memory_space<vmem>>, vector<1x1x128xf32>
    %77 = vector.shape_cast %76 : vector<1x1x128xf32> to vector<1x128xf32>
    %78 = arith.index_cast %c2_i32 : i32 to index
    %c1_35 = arith.constant 1 : index
    %c0_36 = arith.constant 0 : index
    %79 = vector.load %arg4[%78, %c1_35, %c0_36] : memref<3x2x128xf32, #tpu.memory_space<vmem>>, vector<1x1x128xf32>
    %80 = vector.shape_cast %79 : vector<1x1x128xf32> to vector<1x128xf32>
    %cst_37 = arith.constant dense<0.000000e+00> : vector<128xf32>
    %81 = vector.multi_reduction <add>, %74, %cst_37 [0] : vector<8x128xf32> to vector<128xf32>
    %82 = vector.shape_cast %81 : vector<128xf32> to vector<1x128xf32>
    %cst_38 = arith.constant 1.250000e-01 : f32
    %83 = vector.broadcast %cst_38 : f32 to vector<1x128xf32>
    %84 = arith.mulf %82, %83 : vector<1x128xf32>
    %85 = vector.broadcast %84 : vector<1x128xf32> to vector<8x128xf32>
    %86 = arith.subf %74, %85 : vector<8x128xf32>
    %87 = arith.mulf %86, %86 : vector<8x128xf32>
    %cst_39 = arith.constant dense<0.000000e+00> : vector<128xf32>
    %88 = vector.multi_reduction <add>, %87, %cst_39 [0] : vector<8x128xf32> to vector<128xf32>
    %89 = vector.shape_cast %88 : vector<128xf32> to vector<1x128xf32>
    %cst_40 = arith.constant 1.250000e-01 : f32
    %90 = vector.broadcast %cst_40 : f32 to vector<1x128xf32>
    %91 = arith.mulf %89, %90 : vector<1x128xf32>
    %cst_41 = arith.constant 9.99999974E-6 : f32
    %92 = vector.broadcast %cst_41 : f32 to vector<1x128xf32>
    %93 = arith.addf %91, %92 : vector<1x128xf32>
    %94 = math.rsqrt %93 : vector<1x128xf32>
    %95 = arith.mulf %77, %94 : vector<1x128xf32>
    %96 = vector.broadcast %95 : vector<1x128xf32> to vector<8x128xf32>
    %97 = arith.mulf %86, %96 : vector<8x128xf32>
    %98 = vector.broadcast %80 : vector<1x128xf32> to vector<8x128xf32>
    %99 = arith.addf %97, %98 : vector<8x128xf32>
    %cst_42 = arith.constant 0.000000e+00 : f32
    %100 = vector.broadcast %cst_42 : f32 to vector<8x128xf32>
    %101 = arith.maximumf %99, %100 : vector<8x128xf32>
    %102 = arith.truncf %101 : vector<8x128xf32> to vector<8x128xbf16>
    %c3_i32 = arith.constant 3 : i32
    %c0_43 = arith.constant 0 : index
    %c0_44 = arith.constant 0 : index
    %103 = vector.load %arg5[%c0_43, %c0_44] : memref<128x128xbf16, #tpu.memory_space<vmem>>, vector<128x128xbf16>
    %cst_45 = arith.constant dense<0.000000e+00> : vector<8x128xf32>
    %104 = tpu.matmul %102, %103, %cst_45 {dimension_numbers = #tpu.dot_dimension_numbers<[1], [0], [0], [1], [0, 0, 1, 1], [], []>} : vector<8x128xbf16>, vector<128x128xbf16>, vector<8x128xf32> -> vector<8x128xf32>
    %c0_46 = arith.constant 0 : index
    %c0_47 = arith.constant 0 : index
    %105 = vector.load %arg6[%c0_46, %c0_47] : memref<1x128xf32, #tpu.memory_space<vmem>>, vector<1x128xf32>
    %106 = vector.broadcast %105 : vector<1x128xf32> to vector<8x128xf32>
    %107 = arith.addf %104, %106 : vector<8x128xf32>
    %c0_48 = arith.constant 0 : index
    %c0_49 = arith.constant 0 : index
    %108 = vector.load %arg7[%c0_48, %c0_49] : memref<8x128xf32, #tpu.memory_space<vmem>>, vector<8x128xf32>
    tpu.vector_store %arg7[%c0_48, %c0_49], %107 {strides = array<i32>} : memref<8x128xf32, #tpu.memory_space<vmem>>, vector<8x128xf32>,
    return
  }
}

</mosaic_0001>

<bundles_post_ra>
// kernel: _forward.1
= control target key start
LH: loop header
LB: loop body
LE: loop exit
PB: predicated region body
PF: predicated region fallthrough
CT: control target
= control target key end

     0   :  { %12 = vsyncpa [#allocation3], 0  ;;  %s1008_s0 = inlined_call_operand.vmem [shape: bf16[8,128], index: 0, kind: input, shape index: {}]   ;;  %s1009_s1 = inlined_call_operand.hbm [shape: bf16[128,128], index: 1, kind: input, shape index: {}]   ;;  %s1010_s2 = inlined_call_operand.vmem [shape: f32[1,128], index: 2, kind: input, shape index: {}]   ;;  %s1011_s3 = inlined_call_operand.hbm [shape: bf16[3,128,128], index: 3, kind: input, shape index: {}]   ;;  %s1012_s4 = inlined_call_operand.vmem [shape: f32[3,2,128], index: 4, kind: input, shape index: {}]   ;;  %s1013_s5 = inlined_call_operand.hbm [shape: bf16[128,128], index: 5, kind: input, shape index: {}]   ;;  %s1014_s6 = inlined_call_operand.vmem [shape: f32[1,128], index: 6, kind: input, shape index: {}]   ;;  %s1015_s7 = inlined_call_operand.hbm [shape: f32[8,128], index: 7, kind: output, shape index: {}]  }
   0x1   :  { %13 = vsyncpa [#allocation6], 0 }
   0x2   :  { %14 = vsyncpa [#allocation4], 0  ;;  %s36_s26 = sshll.u32 %s1011_s3, 4  ;;  %s923_s27 = smov [#allocation5]   ;;  %s37_s26 = int_to_ptr.hbm [resolvable:$true] %s36_s26 }
   0x3   :  { %s38_s28 = sshll.u32 %s923_s27, 4  ;;  %s21_s8 = sshll.u32 %s1009_s1, 4  ;;  %s39_s28 = int_to_ptr.vmem [resolvable:$true] %s38_s28  ;;  %s22_s8 = int_to_ptr.hbm [resolvable:$true] %s21_s8 }
   0x4   :  { %s924_s9 = smov 64   ;;  %s925_s10 = smov 4  }
   0x5   :  { %44 = dma.hbm_to_vmem [thread:$0]  %s37_s26, 3072, %s39_s28, [#allocation6], %s924_s9, %s924_s9, %s925_s10  }
   0x6   :  { %s926_s11 = smov [#allocation2]   ;;  %s51_s15 = sshll.u32 %s1013_s5, 4  ;;  %s52_s15 = int_to_ptr.hbm [resolvable:$true] %s51_s15 }
   0x7   :  { %s23_s12 = sshll.u32 %s926_s11, 4  ;;  %s927_s3 = smov [#allocation7]   ;;  %s24_s12 = int_to_ptr.vmem [resolvable:$true] %s23_s12 }
   0x8   :  { %29 = dma.hbm_to_vmem [thread:$0]  %s22_s8, 1024, %s24_s12, [#allocation3], %s924_s9, %s924_s9, %s925_s10  }
   0x9   :  { %s53_s16 = sshll.u32 %s927_s3, 4  ;;  %s54_s16 = int_to_ptr.vmem [resolvable:$true] %s53_s16 }
   0xa   :  { %59 = dma.hbm_to_vmem [thread:$0]  %s52_s15, 1024, %s54_s16, [#allocation6], %s924_s9, %s924_s9, %s925_s10  }
   0xb   :  { %917 = dma.done.wait [#allocation3], 1024  }
   0xc   :  { %918 = vsyncadd [#allocation3], 4294966272 }
   0xd   :  { %919 = dma.done.wait [#allocation6], 4096  }
   0xe   :  { %920 = vsyncadd [#allocation6], 4294963200  ;;  %v771_v0 = vld [vmem:[#allocation2 + $0x38] sm:$0xff]  ;;  %v770_v1 = vld [vmem:[#allocation2 + $0x30] sm:$0xff]  ;;  %s928_s8 = smov [#allocation8]   ;;  %s589_s12 = sshll.u32 %s1015_s7, 4  ;;  %s590_s12 = int_to_ptr.hbm [resolvable:$true] %s589_s12 }
   0xf   :  { %143 = vmatpush.bf16.msra.mxu0 %v771_v0  ;;  %v779_v2 = vld [vmem:[#allocation5 + $0x38] sm:$0xff]  ;;  %v769_v3 = vld [vmem:[#allocation2 + $0x28] sm:$0xff]  ;;  %v778_v4 = vld [vmem:[#allocation5 + $0x30] sm:$0xff]  ;;  %s587_s9 = sshll.u32 %s928_s8, 4  ;;  %s588_s9 = int_to_ptr.vmem [resolvable:$true] %s587_s9 }
  0x10   :  { %221 = vmatpush.bf16.msra.mxu1 %v779_v2  ;;  %v777_v5 = vld [vmem:[#allocation5 + $0x28] sm:$0xff]  ;;  %v768_v6 = vld [vmem:[#allocation2 + $0x20] sm:$0xff]  ;;  %v767_v8 = vld [vmem:[#allocation2 + $0x18] sm:$0xff] }
  0x11   :  { %v776_v7 = vld [vmem:[#allocation5 + $0x20] sm:$0xff]  ;;  %v775_v9 = vld [vmem:[#allocation5 + $0x18] sm:$0xff]  ;;  %v766_v10 = vld [vmem:[#allocation2 + $0x10] sm:$0xff] }
  0x12   :  { %v774_v11 = vld [vmem:[#allocation5 + $0x10] sm:$0xff]  ;;  %v765_v12 = vld [vmem:[#allocation2 + $0x8] sm:$0xff]  ;;  %v764_v14 = vld [vmem:[#allocation2] sm:$0xff] }
  0x13   :  { %144 = vmatpush.bf16.msra.mxu0 %v770_v1  ;;  %v773_v13 = vld [vmem:[#allocation5 + $0x8] sm:$0xff]  ;;  %v74_v15 = vld [vmem:[%s1008_s0] sm:$0xf]  ;;  %v787_v23 = vld [vmem:[#allocation5 + $0x78] sm:$0xff] }
  0x14   :  { %222 = vmatpush.bf16.msra.mxu1 %v778_v4  ;;  %v772_v16 = vld [vmem:[#allocation5] sm:$0xff]  ;;  %335 = vmatpush.bf16.msra.mxu2 %v787_v23  ;;  %v786_v26 = vld [vmem:[#allocation5 + $0x70] sm:$0xff]  ;;  %v785_v30 = vld [vmem:[#allocation5 + $0x68] sm:$0xff] }
  0x15   :  { %v810_v17 = vld [vmem:[%s1010_s2] ss:$0 sm:$0xff]  ;;  %v783_v35 = vld [vmem:[#allocation5 + $0x58] sm:$0xff]  ;;  %v782_v38 = vld [vmem:[#allocation5 + $0x50] sm:$0xff] }
  0x16   :  { %v784_v32 = vld [vmem:[#allocation5 + $0x60] sm:$0xff]  ;;  %v781_v41 = vld [vmem:[#allocation5 + $0x48] sm:$0xff]  ;;  %v795_v1 = vld [vmem:[#allocation5 + $0xb8] sm:$0xff] }
  0x17   :  { %145 = vmatpush.bf16.msra.mxu0 %v769_v3  ;;  %v780_v44 = vld [vmem:[#allocation5 + $0x40] sm:$0xff]  ;;  %450 = vmatpush.bf16.msra.mxu3 %v795_v1  ;;  %v794_v4 = vld [vmem:[#allocation5 + $0xb0] sm:$0xff] }
  0x18   :  { %223 = vmatpush.bf16.msra.mxu1 %v777_v5  ;;  %336 = vmatpush.bf16.msra.mxu2 %v786_v26  ;;  %v234_v54 = vld [vmem:[%s1012_s4] sm:$0x1]  ;;  %v811_v59 = vld [vmem:[%s1012_s4 + $0x1] ss:$0 sm:$0xff] }
  0x1b   :  { %146 = vmatpush.bf16.msra.mxu0 %v768_v6  ;;  %451 = vmatpush.bf16.msra.mxu3 %v794_v4 }
  0x1c   :  { %224 = vmatpush.bf16.msra.mxu1 %v776_v7  ;;  %337 = vmatpush.bf16.msra.mxu2 %v785_v30 }
  0x1f   :  { %147 = vmatpush.bf16.msra.mxu0 %v767_v8  ;;  %v793_v8 = vld [vmem:[#allocation5 + $0xa8] sm:$0xff] }
  0x20   :  { %225 = vmatpush.bf16.msra.mxu1 %v775_v9  ;;  %338 = vmatpush.bf16.msra.mxu2 %v784_v32  ;;  %v696_v32 = vld [vmem:[%s1012_s4 + $0x2] sm:$0x1] }
  0x21   :  { %452 = vmatpush.bf16.msra.mxu3 %v793_v8 }
  0x23   :  { %148 = vmatpush.bf16.msra.mxu0 %v766_v10  ;;  %v792_v10 = vld [vmem:[#allocation5 + $0xa0] sm:$0xff] }
  0x24   :  { %226 = vmatpush.bf16.msra.mxu1 %v774_v11  ;;  %339 = vmatpush.bf16.msra.mxu2 %v783_v35 }
  0x25   :  { %453 = vmatpush.bf16.msra.mxu3 %v792_v10  ;;  %v730_v10 = vld [vmem:[%s1012_s4 + $0x4] sm:$0x1] }
  0x27   :  { %149 = vmatpush.bf16.msra.mxu0 %v765_v12 }
  0x28   :  { %227 = vmatpush.bf16.msra.mxu1 %v773_v13  ;;  %340 = vmatpush.bf16.msra.mxu2 %v782_v38  ;;  %v791_v13 = vld [vmem:[#allocation5 + $0x98] sm:$0xff] }
  0x29   :  { %454 = vmatpush.bf16.msra.mxu3 %v791_v13 }
  0x2b   :  { %150 = vmatpush.bf16.msra.mxu0 %v764_v14 }
  0x2c   :  { %228 = vmatpush.bf16.msra.mxu1 %v772_v16  ;;  %341 = vmatpush.bf16.msra.mxu2 %v781_v41  ;;  %v790_v16 = vld [vmem:[#allocation5 + $0x90] sm:$0xff] }
  0x2d   :  { %455 = vmatpush.bf16.msra.mxu3 %v790_v16 }
  0x2e   :  { %151 = vmatmul.bf16.vlgmr.msra.gmra.mxu0 %v74_v15 }
  0x30   :  { %342 = vmatpush.bf16.msra.mxu2 %v780_v44 }
  0xab   :  { %v152_v18 = vpop.f32.mrf.mxu0 }
  0xac   :  { %v153_v19 = vadd.f32 %v810_v17, %v152_v18 }
  0xae   :  { %v156_v20 = vpack.c.bf16 %v153_v19, %v153_v19  ;;  %v789_v19 = vld [vmem:[#allocation5 + $0x88] sm:$0xff] }
  0xaf   :  { %456 = vmatpush.bf16.msra.mxu3 %v789_v19 }
  0xb0   :  { %229 = vmatmul.bf16.vlgmr.msra.gmra.mxu1 %v156_v20 }
  0xb3   :  { %v154_v21 = vpop.f32.mrf.mxu0 }
 0x12d   :  { %v230_v22 = vpop.f32.mrf.mxu1 }
 0x12e   :  { %v236_v24 = vrot.slane %v230_v22, 4 }
 0x130   :  { %v237_v25 = vadd.f32 %v236_v24, %v230_v22 }
 0x132   :  { %v238_v27 = vrot.slane %v237_v25, 2 }
 0x134   :  { %v239_v28 = vadd.f32 %v238_v27, %v237_v25 }
 0x135   :  { %v232_v29 = vpop.f32.mrf.mxu1 }
 0x136   :  { %v240_v31 = vrot.slane %v239_v28, 1 }
 0x138   :  { %v241_v33 = vadd.f32 %v240_v31, %v239_v28 }
 0x13a   :  { %v242_v34 = vmul.f32 0.125, %v241_v33 }
 0x13c   :  { %v243_v36 = vsub.f32 %v230_v22, %v242_v34  ;;  %v788_v22 = vld [vmem:[#allocation5 + $0x80] sm:$0xff] }
 0x13d   :  { %457 = vmatpush.bf16.msra.mxu3 %v788_v22 }
 0x13e   :  { %v244_v37 = vmul.f32 %v243_v36, %v243_v36 }
 0x140   :  { %v245_v39 = vrot.slane %v244_v37, 4 }
 0x142   :  { %v246_v40 = vadd.f32 %v245_v39, %v244_v37  ;;  %v812_v37 = vld [vmem:[%s1012_s4 + $0x3] ss:$0 sm:$0xff] }
 0x144   :  { %v247_v42 = vrot.slane %v246_v40, 2 }
 0x146   :  { %v248_v43 = vadd.f32 %v247_v42, %v246_v40 }
 0x148   :  { %v249_v45 = vrot.slane %v248_v43, 1 }
 0x14a   :  { %v250_v46 = vadd.f32 %v249_v45, %v248_v43  ;;  %v803_v43 = vld [vmem:[#allocation7 + $0x38] sm:$0xff] }
 0x14b   :  { %568 = vmatpush.bf16.msrb.mxu0 %v803_v43 }
 0x14c   :  { %v251_v47 = vmul.f32 0.125, %v250_v46  ;;  %v802_v46 = vld [vmem:[#allocation7 + $0x30] sm:$0xff] }
 0x14e   :  { %v252_v48 = vadd.f32 1e-05, %v251_v47 }
 0x14f   :  { %569 = vmatpush.bf16.msrb.mxu0 %v802_v46 }
 0x150   :  { %815 = vrsqrt.f32 %v252_v48  ;;  %vm259_vm1 = vweird.f32 %v252_v48 }
 0x156   :  { %v816_v49 = vpop.eup %815 }
 0x157   :  { %v254_v50 = vmul.f32 %v816_v49, %v252_v48  ;;  %vm260_vm0 = vweird.f32 %v816_v49 }
 0x158   :  { %vm261_vm2 = vmor %vm259_vm1, %vm260_vm0 }
 0x159   :  { %v255_v51 = vmul.f32 %v816_v49, %v254_v50  ;;  %v801_v50 = vld [vmem:[#allocation7 + $0x28] sm:$0xff] }
 0x15a   :  { %570 = vmatpush.bf16.msrb.mxu0 %v801_v50 }
 0x15b   :  { %v256_v52 = vmul.f32 0.5, %v255_v51 }
 0x15d   :  { %v257_v53 = vsub.f32 1.5, %v256_v52 }
 0x15f   :  { %v258_v55 = vmul.f32 %v816_v49, %v257_v53  ;;  %v800_v53 = vld [vmem:[#allocation7 + $0x20] sm:$0xff] }
 0x160   :  { %571 = vmatpush.bf16.msrb.mxu0 %v800_v53 }
 0x161   :  { %v262_v56 = vsel %vm261_vm2, %v816_v49, %v258_v55 }
 0x162   :  { %v263_v57 = vmul.f32 %v262_v56, %v234_v54  ;;  %v799_v56 = vld [vmem:[#allocation7 + $0x18] sm:$0xff] }
 0x164   :  { %v264_v58 = vperm.slane %v263_v57, 0  ;;  %572 = vmatpush.bf16.msrb.mxu0 %v799_v56 }
 0x166   :  { %v265_v60 = vmul.f32 %v264_v58, %v243_v36 }
 0x168   :  { %v267_v61 = vadd.f32 %v811_v59, %v265_v60  ;;  %v798_v59 = vld [vmem:[#allocation7 + $0x10] sm:$0xff] }
 0x169   :  { %573 = vmatpush.bf16.msrb.mxu0 %v798_v59 }
 0x16a   :  { %v268_v62 = vmax.f32 %v267_v61, 0.0 }
 0x16c   :  { %v269_v63 = vpack.c.bf16 %v268_v62, %v268_v62  ;;  %v797_v62 = vld [vmem:[#allocation7 + $0x8] sm:$0xff] }
 0x16d   :  { %574 = vmatpush.bf16.msrb.mxu0 %v797_v62 }
 0x16e   :  { %343 = vmatmul.bf16.vlgmr.msra.gmra.mxu2 %v269_v63 }
 0x1f1   :  { %v344_v0 = vpop.f32.mrf.mxu2 }
 0x1f2   :  { %v351_v2 = vrot.slane %v344_v0, 4 }
 0x1f4   :  { %v352_v3 = vadd.f32 %v351_v2, %v344_v0 }
 0x1f6   :  { %v353_v5 = vrot.slane %v352_v3, 2 }
 0x1f8   :  { %v354_v6 = vadd.f32 %v353_v5, %v352_v3 }
 0x1f9   :  { %v346_v7 = vpop.f32.mrf.mxu2 }
 0x1fa   :  { %v355_v9 = vrot.slane %v354_v6, 1 }
 0x1fc   :  { %v356_v11 = vadd.f32 %v355_v9, %v354_v6 }
 0x1fe   :  { %v357_v12 = vmul.f32 0.125, %v356_v11 }
 0x200   :  { %v358_v14 = vsub.f32 %v344_v0, %v357_v12  ;;  %v796_v0 = vld [vmem:[#allocation7] sm:$0xff] }
 0x201   :  { %575 = vmatpush.bf16.msrb.mxu0 %v796_v0 }
 0x202   :  { %v359_v15 = vmul.f32 %v358_v14, %v358_v14 }
 0x204   :  { %v360_v17 = vrot.slane %v359_v15, 4 }
 0x206   :  { %v361_v18 = vadd.f32 %v360_v17, %v359_v15  ;;  %v813_v15 = vld [vmem:[%s1012_s4 + $0x5] ss:$0 sm:$0xff] }
 0x208   :  { %v362_v20 = vrot.slane %v361_v18, 2 }
 0x20a   :  { %v363_v21 = vadd.f32 %v362_v20, %v361_v18  ;;  %v814_v20 = vld [vmem:[%s1014_s6] ss:$0 sm:$0xff] }
 0x20c   :  { %v364_v23 = vrot.slane %v363_v21, 1 }
 0x20e   :  { %v365_v24 = vadd.f32 %v364_v23, %v363_v21 }
 0x210   :  { %v366_v25 = vmul.f32 0.125, %v365_v24 }
 0x212   :  { %v367_v26 = vadd.f32 1e-05, %v366_v25 }
 0x214   :  { %817 = vrsqrt.f32 %v367_v26  ;;  %vm374_vm4 = vweird.f32 %v367_v26 }
 0x21a   :  { %v818_v27 = vpop.eup %817 }
 0x21b   :  { %v369_v28 = vmul.f32 %v818_v27, %v367_v26  ;;  %vm375_vm3 = vweird.f32 %v818_v27 }
 0x21c   :  { %vm376_vm5 = vmor %vm374_vm4, %vm375_vm3 }
 0x21d   :  { %v370_v29 = vmul.f32 %v818_v27, %v369_v28 }
 0x21f   :  { %v371_v30 = vmul.f32 0.5, %v370_v29 }
 0x221   :  { %v372_v31 = vsub.f32 1.5, %v371_v30 }
 0x223   :  { %v373_v33 = vmul.f32 %v818_v27, %v372_v31 }
 0x225   :  { %v377_v34 = vsel %vm376_vm5, %v818_v27, %v373_v33 }
 0x226   :  { %v378_v35 = vmul.f32 %v696_v32, %v377_v34 }
 0x228   :  { %v379_v36 = vperm.slane %v378_v35, 0 }
 0x22a   :  { %v380_v38 = vmul.f32 %v379_v36, %v358_v14 }
 0x22c   :  { %v382_v39 = vadd.f32 %v812_v37, %v380_v38 }
 0x22e   :  { %v383_v40 = vmax.f32 %v382_v39, 0.0 }
 0x230   :  { %v384_v41 = vpack.c.bf16 %v383_v40, %v383_v40 }
 0x232   :  { %458 = vmatmul.bf16.vlgmr.msra.gmra.mxu3 %v384_v41 }
 0x2b5   :  { %v459_v42 = vpop.f32.mrf.mxu3 }
 0x2b6   :  { %v466_v44 = vrot.slane %v459_v42, 4 }
 0x2b8   :  { %v467_v45 = vadd.f32 %v466_v44, %v459_v42 }
 0x2ba   :  { %v468_v47 = vrot.slane %v467_v45, 2 }
 0x2bc   :  { %v469_v48 = vadd.f32 %v468_v47, %v467_v45 }
 0x2bd   :  { %v461_v49 = vpop.f32.mrf.mxu3 }
 0x2be   :  { %v470_v51 = vrot.slane %v469_v48, 1 }
 0x2c0   :  { %v471_v52 = vadd.f32 %v470_v51, %v469_v48 }
 0x2c2   :  { %v472_v54 = vmul.f32 0.125, %v471_v52 }
 0x2c4   :  { %v473_v55 = vsub.f32 %v459_v42, %v472_v54 }
 0x2c6   :  { %v474_v57 = vmul.f32 %v473_v55, %v473_v55 }
 0x2c8   :  { %v475_v58 = vrot.slane %v474_v57, 4 }
 0x2ca   :  { %v476_v60 = vadd.f32 %v475_v58, %v474_v57 }
 0x2cc   :  { %v477_v61 = vrot.slane %v476_v60, 2 }
 0x2ce   :  { %v478_v63 = vadd.f32 %v477_v61, %v476_v60 }
 0x2d0   :  { %v479_v1 = vrot.slane %v478_v63, 1 }
 0x2d2   :  { %v480_v2 = vadd.f32 %v479_v1, %v478_v63 }
 0x2d4   :  { %v481_v3 = vmul.f32 0.125, %v480_v2 }
 0x2d6   :  { %v482_v4 = vadd.f32 1e-05, %v481_v3 }
 0x2d8   :  { %819 = vrsqrt.f32 %v482_v4  ;;  %vm489_vm7 = vweird.f32 %v482_v4 }
 0x2de   :  { %v820_v5 = vpop.eup %819 }
 0x2df   :  { %v484_v6 = vmul.f32 %v820_v5, %v482_v4  ;;  %vm490_vm6 = vweird.f32 %v820_v5 }
 0x2e0   :  { %vm491_vm8 = vmor %vm489_vm7, %vm490_vm6 }
 0x2e1   :  { %v485_v7 = vmul.f32 %v820_v5, %v484_v6 }
 0x2e3   :  { %v486_v8 = vmul.f32 0.5, %v485_v7 }
 0x2e5   :  { %v487_v9 = vsub.f32 1.5, %v486_v8 }
 0x2e7   :  { %v488_v11 = vmul.f32 %v820_v5, %v487_v9 }
 0x2e9   :  { %v492_v12 = vsel %vm491_vm8, %v820_v5, %v488_v11 }
 0x2ea   :  { %v493_v13 = vmul.f32 %v730_v10, %v492_v12 }
 0x2ec   :  { %v494_v14 = vperm.slane %v493_v13, 0 }
 0x2ee   :  { %v495_v16 = vmul.f32 %v494_v14, %v473_v55 }
 0x2f0   :  { %v497_v17 = vadd.f32 %v813_v15, %v495_v16 }
 0x2f2   :  { %v498_v18 = vmax.f32 %v497_v17, 0.0 }
 0x2f4   :  { %v499_v19 = vpack.c.bf16 %v498_v18, %v498_v18 }
 0x2f6   :  { %576 = vmatmul.bf16.vlgmr.msrb.gmra.mxu0 %v499_v19 }
 0x373   :  { %v577_v21 = vpop.f32.mrf.mxu0 }
 0x374   :  { %v578_v22 = vadd.f32 %v814_v20, %v577_v21 }
 0x376   :  { %581 = vst [vmem:[#allocation8] sm:$0xff] %v578_v22 }
 0x377   :  { %592 = dma.vmem_to_hbm [thread:$0]  %s588_s9, 128, %s590_s12, [#allocation4]  }
 0x37b   :  { %v579_v23 = vpop.f32.mrf.mxu0 }
 0x37c   :  { %921 = dma.done.wait [#allocation4], 128  }
 0x37d   :  { %922 = vsyncadd [#allocation4], 4294967168 }
 0x37e   :  { %597 = vsyncpa [#allocation3], 1 }
 0x37f   :  { %598 = vsyncpa [#allocation6], 1 }
 0x380   :  { %599 = vsyncpa [#allocation4], 1 }

</bundles_post_ra>
